<compile_context>
chip_gen: v6e
topology: v6e:2x2x1
jax: 0.10.0
libtpu: 0.0.40
codegen_flags: <defaults>
</compile_context>

<pallas_src>
import functools

import jax
import jax.numpy as jnp
from jax import lax
from jax.experimental import pallas as pl
from jax.experimental.pallas import tpu as pltpu

LN_EPS = 1e-5


def _round_up(x, m):
    return ((x + m - 1) // m) * m


def _tpu_generation():
    try:
        kind = jax.devices()[0].device_kind.lower()
    except Exception:
        return ""
    if "v7" in kind or "7x" in kind:
        return "v7"
    if "v6" in kind:
        return "v6"
    if "v5" in kind:
        return "v5"
    return ""


def _vmem_capacity_bytes():
    try:
        return int(pltpu.get_tpu_info().vmem_capacity_bytes)
    except Exception:
        return 64 * 1024 * 1024 if _tpu_generation() == "v7" else 128 * 1024 * 1024


def ffn_encoder_layer_kernel(x_ref, g_ref, beta_ref, w1_ref, b1_ref,
                             w2_ref, b2_ref, o_ref, xn_sc, acc_sc):
    """One (token-tile i, hidden-chunk f) grid step."""
    f = pl.program_id(1)

    # --- first hidden chunk: LayerNorm the token tile, seed the accumulator ---
    # Fused-stats LN: E[x] and E[x^2] are independent reductions,
    # var = E[x^2] - E[x]^2 (removes the dependent center-then-reduce pass).
    @pl.when(f == 0)
    def _():
        x = x_ref[...].astype(jnp.float32)                    # (TM, D)
        mean = jnp.mean(x, axis=-1, keepdims=True)
        msq = jnp.mean(x * x, axis=-1, keepdims=True)
        var = msq - mean * mean
        xn = (x - mean) * lax.rsqrt(var + LN_EPS)
        xn = xn * g_ref[...] + beta_ref[...]                  # affine (f32)
        xn_sc[...] = xn.astype(jnp.bfloat16)                  # bf16 MXU operand
        acc_sc[...] = x                                       # residual (f32)
        # NOTE: rows past the real token count in a partial last tile carry
        # undefined data; everything is row-local through LN and the matmuls
        # and those rows are masked on the output store — benign by design.

    # --- fc1 chunk -> relu -> fc2 chunk, accumulate in f32 ---
    # w1 is shipped transposed (tf, D): contiguous row-slice DMA; contract on D.
    h = lax.dot_general(xn_sc[...], w1_ref[...],
                        dimension_numbers=(((1,), (1,)), ((), ())),
                        preferred_element_type=jnp.float32)    # (TM, tf)
    h = jnp.maximum(h + b1_ref[...], 0.0).astype(jnp.bfloat16)
    acc_sc[...] += jnp.dot(h, w2_ref[...], preferred_element_type=jnp.float32)

    # --- last hidden chunk: add fc2 bias and write the output tile ---
    @pl.when(f == pl.num_programs(1) - 1)
    def _():
        o_ref[...] = (acc_sc[...] + b2_ref[...]).astype(o_ref.dtype)


@functools.partial(jax.jit, static_argnames=("tile_m", "f_tile"))
def ffn_encoder_layer(x, gamma, beta, w1, b1, w2, b2, *, tile_m=None, f_tile=None):
    """x: (seq_len, batch, embed_dim).  Returns the same shape."""
    S, B, D = x.shape
    F = w1.shape[1]
    tokens = S * B
    x2d = x.reshape(tokens, D)
    itemsize = x.dtype.itemsize

    gen = _tpu_generation()
    cap = _vmem_capacity_bytes()
    budget = int(0.75 * cap)

    # ---- token tile: per-generation roofline target (v6e needs ~670 FLOPs/B,
    # v7x ~310, v5e ~240; intensity here ~ tm when weights stream) ----
    if tile_m is None:
        tm_target = {"v5": 256, "v6": 512, "v7": 512}.get(gen, 256)
    else:
        tm_target = int(tile_m)
    tm = min(tm_target, _round_up(tokens, 8))
    if tm >= 128:
        tm = (tm // 128) * 128          # fully populated 128-row MXU passes
    else:
        tm = max(8, (tm // 8) * 8)

    def _fixed_bytes(tm_):
        return (2 * 2 * tm_ * D * itemsize     # x in + out tiles, double-buffered
                + tm_ * D * (2 + 4)            # xn (bf16) + acc (f32) scratch
                + 2 * 3 * D * 4)               # gamma / beta / b2

    # Keep per-token-tile buffers within half the budget; leave the rest for
    # weight chunks (matters on v7x's 64 MiB VMEM with large D).
    while tm > 128 and _fixed_bytes(tm) > budget // 2:
        tm -= 128

    # ---- pad FFN dim to a multiple of 128 (zero hidden units are exact) ----
    F_pad = _round_up(F, 128)
    if F_pad != F:
        w1 = jnp.pad(w1, ((0, 0), (0, F_pad - F)))
        b1 = jnp.pad(b1, ((0, 0), (0, F_pad - F)))
        w2 = jnp.pad(w2, ((0, F_pad - F), (0, 0)))

    def _chunk_bytes(tf_, nbuf):
        return (nbuf * (2 * tf_ * D * 2 + tf_ * 4)   # bf16 w1t/w2 chunks + f32 b1 chunk
                + 2 * tm * tf_ * 4)                  # fc1 intermediate headroom (f32)

    fixed = _fixed_bytes(tm)
    fits_resident = fixed + _chunk_bytes(F_pad, 1) <= budget

    # ---- hidden chunk tf: VMEM-resident weights when they fit (DMA'd exactly
    # once for the whole kernel); otherwise the largest multiple-of-128 divisor
    # of F_pad whose double-buffered chunks fit the budget. ----
    if f_tile is not None and F_pad % int(f_tile) == 0 and int(f_tile) % 128 == 0:
        tf = int(f_tile)
    elif fits_resident:
        tf = F_pad
    else:
        k = F_pad // 128
        tf = 128
        for m in range(k, 0, -1):
            if k % m == 0 and fixed + _chunk_bytes(128 * m, 2) <= budget:
                tf = 128 * m
                break

    resident = (tf == F_pad) and fits_resident
    nbuf_w = 1 if resident else 2

    # Ship weights as bf16 (halves DMA / VMEM); fc1 weight pre-transposed to
    # (F, D) so both weight chunks are contiguous row slices.
    # (In a real model the transposed bf16 copy would be kept as the parameter.)
    w1t = jnp.transpose(w1).astype(jnp.bfloat16)     # (F_pad, D)
    w2b = w2.astype(jnp.bfloat16)                    # (F_pad, D)

    grid = (pl.cdiv(tokens, tm), F_pad // tf)

    vmem_need = fixed + _chunk_bytes(tf, nbuf_w)
    vmem_limit = min(int(0.92 * cap), max(32 * 1024 * 1024, int(1.5 * vmem_need)))

    # Honest HBM-traffic estimate: weights are re-streamed once per token tile
    # unless their block index is grid-constant (tf == F_pad).
    num_token_tiles = pl.cdiv(tokens, tm)
    weight_passes = 1 if tf == F_pad else num_token_tiles
    flops = 4 * tokens * D * F_pad
    bytes_accessed = (2 * tokens * D * itemsize
                      + weight_passes * (2 * D * F_pad * 2 + F_pad * 4)
                      + 3 * D * 4)
    cost = pl.CostEstimate(flops=flops, transcendentals=tokens,
                           bytes_accessed=bytes_accessed)

    # Single-buffer weight blocks ONLY when their block index is constant over
    # the whole grid (tf == F_pad): halves weight VMEM with zero overlap loss.
    # Never single-buffer streaming chunks (would serialize DMA with matmuls).
    w_mode = dict(pipeline_mode=pl.Buffered(1)) if resident else {}
    w1_spec = pl.BlockSpec((tf, D), lambda i, f: (f, 0), **w_mode)
    b1_spec = pl.BlockSpec((1, tf), lambda i, f: (0, f), **w_mode)
    w2_spec = pl.BlockSpec((tf, D), lambda i, f: (f, 0), **w_mode)

    out2d = pl.pallas_call(
        ffn_encoder_layer_kernel,
        out_shape=jax.ShapeDtypeStruct((tokens, D), x.dtype),
        grid_spec=pltpu.PrefetchScalarGridSpec(
            num_scalar_prefetch=0,
            grid=grid,
            in_specs=[
                pl.BlockSpec((tm, D), lambda i, f: (i, 0)),   # x token tile
                pl.BlockSpec((1, D), lambda i, f: (0, 0)),    # ln gamma
                pl.BlockSpec((1, D), lambda i, f: (0, 0)),    # ln beta
                w1_spec,                                      # fc1 weight chunk (tf, D)
                b1_spec,                                      # fc1 bias chunk (1, tf)
                w2_spec,                                      # fc2 weight chunk (tf, D)
                pl.BlockSpec((1, D), lambda i, f: (0, 0)),    # fc2 bias
            ],
            out_specs=pl.BlockSpec((tm, D), lambda i, f: (i, 0)),
            scratch_shapes=[
                pltpu.VMEM((tm, D), jnp.bfloat16),            # normalized tile (xn)
                pltpu.VMEM((tm, D), jnp.float32),             # residual + FFN accumulator
            ],
        ),
        compiler_params=pltpu.CompilerParams(
            dimension_semantics=("parallel", "arbitrary"),
            vmem_limit_bytes=vmem_limit),
        cost_estimate=cost,
    )(x2d, gamma, beta, w1t, b1, w2b, b2)

    return out2d.reshape(S, B, D)


def reference_ffn_encoder_layer(x, gamma, beta, w1, b1, w2, b2):
    """Pure-JAX reference with the same bf16-operand / f32-accumulate precision."""
    xf = x.astype(jnp.float32)
    mean = jnp.mean(xf, axis=-1, keepdims=True)
    var = jnp.mean((xf - mean) ** 2, axis=-1, keepdims=True)
    xn = (xf - mean) * lax.rsqrt(var + LN_EPS) * gamma[0] + beta[0]
    h = jnp.dot(xn.astype(jnp.bfloat16), w1.astype(jnp.bfloat16),
                preferred_element_type=jnp.float32) + b1[0]
    h = jnp.maximum(h, 0.0)
    y = jnp.dot(h.astype(jnp.bfloat16), w2.astype(jnp.bfloat16),
                preferred_element_type=jnp.float32) + b2[0]
    return (xf + y).astype(x.dtype)


if __name__ == "__main__":
    def run_case(S, B, D, F, **kw):
        key = jax.random.PRNGKey(0)
        kx, kw1, kw2, kb1, kb2, kg, kbt = jax.random.split(key, 7)
        x = jax.random.normal(kx, (S, B, D), dtype=jnp.float32)
        gamma = 1.0 + 0.1 * jax.random.normal(kg, (1, D), jnp.float32)
        beta = 0.1 * jax.random.normal(kbt, (1, D), jnp.float32)
        w1 = jax.random.normal(kw1, (D, F), jnp.float32) * (1.0 / jnp.sqrt(D))
        b1 = jax.random.normal(kb1, (1, F), jnp.float32) * 0.01
        w2 = jax.random.normal(kw2, (F, D), jnp.float32) * (1.0 / jnp.sqrt(F))
        b2 = jax.random.normal(kb2, (1, D), jnp.float32) * 0.01

        out = ffn_encoder_layer(x, gamma, beta, w1, b1, w2, b2, **kw)
        out = jax.block_until_ready(out)
        ref = reference_ffn_encoder_layer(x, gamma, beta, w1, b1, w2, b2)
        assert out.shape == (S, B, D)
        err = jnp.max(jnp.abs(out - ref))
        assert jnp.allclose(out, ref, atol=2e-3, rtol=2e-3), (
            f"mismatch vs reference for shape {(S, B, D, F)}: max abs err {err}")

    # Small, lane-dense shapes: weights VMEM-resident (tf == F, single-buffered).
    run_case(S=8, B=2, D=128, F=256)
    # Token tiling + explicit hidden-chunk streaming (accumulation over f axis).
    run_case(S=64, B=8, D=256, F=1024, f_tile=512)
    # Non-multiple-of-128 FFN dim: exercises the zero-padding path (F=320 -> 384).
    run_case(S=16, B=4, D=192, F=320)

    print("KERNEL_OK")
</pallas_src>

<mosaic_0001>
module attributes {stable_mosaic.version = 11 : i64} {
  func.func @ffn_encoder_layer_kernel(%arg0: i32, %arg1: i32, %arg2: memref<16x128xf32, #tpu.memory_space<vmem>>, %arg3: memref<1x128xf32, #tpu.memory_space<vmem>>, %arg4: memref<1x128xf32, #tpu.memory_space<vmem>>, %arg5: memref<256x128xbf16, #tpu.memory_space<vmem>>, %arg6: memref<1x256xf32, #tpu.memory_space<vmem>>, %arg7: memref<256x128xbf16, #tpu.memory_space<vmem>>, %arg8: memref<1x128xf32, #tpu.memory_space<vmem>>, %arg9: memref<16x128xf32, #tpu.memory_space<vmem>>, %arg10: memref<16x128xbf16, #tpu.memory_space<vmem>>, %arg11: memref<16x128xf32, #tpu.memory_space<vmem>>) attributes {dimension_semantics = [#tpu.dimension_semantics<parallel>, #tpu.dimension_semantics<arbitrary>], iteration_bounds = array<i64: 1, 1>, scalar_prefetch = 0 : i64, scratch_operands = 2 : i64, tpu.core_type = #tpu.core_type<tc>, window_params = [{transform_indices = @transform_0, window_bounds = array<i64: 16, 128>}, {pipeline_mode = #tpu.pipeline_mode<synchronous>, transform_indices = @transform_1, window_bounds = array<i64: 1, 128>}, {pipeline_mode = #tpu.pipeline_mode<synchronous>, transform_indices = @transform_2, window_bounds = array<i64: 1, 128>}, {pipeline_mode = #tpu.pipeline_mode<synchronous>, transform_indices = @transform_3, window_bounds = array<i64: 256, 128>}, {pipeline_mode = #tpu.pipeline_mode<synchronous>, transform_indices = @transform_4, window_bounds = array<i64: 1, 256>}, {pipeline_mode = #tpu.pipeline_mode<synchronous>, transform_indices = @transform_5, window_bounds = array<i64: 256, 128>}, {pipeline_mode = #tpu.pipeline_mode<synchronous>, transform_indices = @transform_6, window_bounds = array<i64: 1, 128>}, {transform_indices = @transform_7, window_bounds = array<i64: 16, 128>}]} {
    %c0_i32 = arith.constant 0 : i32
    %0 = arith.cmpi eq, %arg1, %c0_i32 : i32
    %1 = arith.extui %0 : i1 to i32
    %c0_i32_0 = arith.constant 0 : i32
    %2 = arith.cmpi ne, %1, %c0_i32_0 : i32
    scf.if %2 {
      %c0_16 = arith.constant 0 : index
      %c0_17 = arith.constant 0 : index
      %20 = vector.load %arg2[%c0_16, %c0_17] : memref<16x128xf32, #tpu.memory_space<vmem>>, vector<16x128xf32>
      %cst_18 = arith.constant dense<0.000000e+00> : vector<16xf32>
      %21 = vector.multi_reduction <add>, %20, %cst_18 [1] : vector<16x128xf32> to vector<16xf32>
      %22 = vector.shape_cast %21 : vector<16xf32> to vector<16x1xf32>
      %cst_19 = arith.constant 1.280000e+02 : f32
      %23 = vector.broadcast %cst_19 : f32 to vector<16x1xf32>
      %24 = arith.divf %22, %23 : vector<16x1xf32>
      %25 = arith.mulf %20, %20 : vector<16x128xf32>
      %cst_20 = arith.constant dense<0.000000e+00> : vector<16xf32>
      %26 = vector.multi_reduction <add>, %25, %cst_20 [1] : vector<16x128xf32> to vector<16xf32>
      %27 = vector.shape_cast %26 : vector<16xf32> to vector<16x1xf32>
      %cst_21 = arith.constant 1.280000e+02 : f32
      %28 = vector.broadcast %cst_21 : f32 to vector<16x1xf32>
      %29 = arith.divf %27, %28 : vector<16x1xf32>
      %30 = arith.mulf %24, %24 : vector<16x1xf32>
      %31 = arith.subf %29, %30 : vector<16x1xf32>
      %32 = vector.broadcast %24 : vector<16x1xf32> to vector<16x128xf32>
      %33 = arith.subf %20, %32 : vector<16x128xf32>
      %cst_22 = arith.constant 9.99999974E-6 : f32
      %34 = vector.broadcast %cst_22 : f32 to vector<16x1xf32>
      %35 = arith.addf %31, %34 : vector<16x1xf32>
      %36 = math.rsqrt %35 : vector<16x1xf32>
      %37 = vector.broadcast %36 : vector<16x1xf32> to vector<16x128xf32>
      %38 = arith.mulf %33, %37 : vector<16x128xf32>
      %c0_23 = arith.constant 0 : index
      %c0_24 = arith.constant 0 : index
      %39 = vector.load %arg3[%c0_23, %c0_24] : memref<1x128xf32, #tpu.memory_space<vmem>>, vector<1x128xf32>
      %40 = vector.broadcast %39 : vector<1x128xf32> to vector<16x128xf32>
      %41 = arith.mulf %38, %40 : vector<16x128xf32>
      %c0_25 = arith.constant 0 : index
      %c0_26 = arith.constant 0 : index
      %42 = vector.load %arg4[%c0_25, %c0_26] : memref<1x128xf32, #tpu.memory_space<vmem>>, vector<1x128xf32>
      %43 = vector.broadcast %42 : vector<1x128xf32> to vector<16x128xf32>
      %44 = arith.addf %41, %43 : vector<16x128xf32>
      %45 = arith.truncf %44 : vector<16x128xf32> to vector<16x128xbf16>
      %c0_27 = arith.constant 0 : index
      %c0_28 = arith.constant 0 : index
      %46 = vector.load %arg10[%c0_27, %c0_28] : memref<16x128xbf16, #tpu.memory_space<vmem>>, vector<16x128xbf16>
      tpu.vector_store %arg10[%c0_27, %c0_28], %45 {strides = array<i32>} : memref<16x128xbf16, #tpu.memory_space<vmem>>, vector<16x128xbf16>,
      %c0_29 = arith.constant 0 : index
      %c0_30 = arith.constant 0 : index
      %47 = vector.load %arg11[%c0_29, %c0_30] : memref<16x128xf32, #tpu.memory_space<vmem>>, vector<16x128xf32>
      tpu.vector_store %arg11[%c0_29, %c0_30], %20 {strides = array<i32>} : memref<16x128xf32, #tpu.memory_space<vmem>>, vector<16x128xf32>,
    } else {
    }
    %c0 = arith.constant 0 : index
    %c0_1 = arith.constant 0 : index
    %3 = vector.load %arg10[%c0, %c0_1] : memref<16x128xbf16, #tpu.memory_space<vmem>>, vector<16x128xbf16>
    %c0_2 = arith.constant 0 : index
    %c0_3 = arith.constant 0 : index
    %4 = vector.load %arg5[%c0_2, %c0_3] : memref<256x128xbf16, #tpu.memory_space<vmem>>, vector<256x128xbf16>
    %cst = arith.constant dense<0.000000e+00> : vector<16x256xf32>
    %5 = tpu.matmul %3, %4, %cst {dimension_numbers = #tpu.dot_dimension_numbers<[1], [1], [0], [0], [0, 0, 1, 0], [], []>} : vector<16x128xbf16>, vector<256x128xbf16>, vector<16x256xf32> -> vector<16x256xf32>
    %c0_4 = arith.constant 0 : index
    %c0_5 = arith.constant 0 : index
    %6 = vector.load %arg6[%c0_4, %c0_5] : memref<1x256xf32, #tpu.memory_space<vmem>>, vector<1x256xf32>
    %7 = vector.broadcast %6 : vector<1x256xf32> to vector<16x256xf32>
    %8 = arith.addf %5, %7 : vector<16x256xf32>
    %cst_6 = arith.constant 0.000000e+00 : f32
    %9 = vector.broadcast %cst_6 : f32 to vector<16x256xf32>
    %10 = arith.maximumf %8, %9 : vector<16x256xf32>
    %11 = arith.truncf %10 : vector<16x256xf32> to vector<16x256xbf16>
    %c0_7 = arith.constant 0 : index
    %c0_8 = arith.constant 0 : index
    %12 = vector.load %arg11[%c0_7, %c0_8] : memref<16x128xf32, #tpu.memory_space<vmem>>, vector<16x128xf32>
    %c0_9 = arith.constant 0 : index
    %c0_10 = arith.constant 0 : index
    %13 = vector.load %arg7[%c0_9, %c0_10] : memref<256x128xbf16, #tpu.memory_space<vmem>>, vector<256x128xbf16>
    %cst_11 = arith.constant dense<0.000000e+00> : vector<16x128xf32>
    %14 = tpu.matmul %11, %13, %cst_11 {dimension_numbers = #tpu.dot_dimension_numbers<[1], [0], [0], [1], [0, 0, 1, 1], [], []>} : vector<16x256xbf16>, vector<256x128xbf16>, vector<16x128xf32> -> vector<16x128xf32>
    %15 = arith.addf %12, %14 : vector<16x128xf32>
    %c0_12 = arith.constant 0 : index
    %c0_13 = arith.constant 0 : index
    %16 = vector.load %arg11[%c0_12, %c0_13] : memref<16x128xf32, #tpu.memory_space<vmem>>, vector<16x128xf32>
    tpu.vector_store %arg11[%c0_12, %c0_13], %15 {strides = array<i32>} : memref<16x128xf32, #tpu.memory_space<vmem>>, vector<16x128xf32>,
    %c0_i32_14 = arith.constant 0 : i32
    %17 = arith.cmpi eq, %arg1, %c0_i32_14 : i32
    %18 = arith.extui %17 : i1 to i32
    %c0_i32_15 = arith.constant 0 : i32
    %19 = arith.cmpi ne, %18, %c0_i32_15 : i32
    scf.if %19 {
      %c0_16 = arith.constant 0 : index
      %c0_17 = arith.constant 0 : index
      %20 = vector.load %arg11[%c0_16, %c0_17] : memref<16x128xf32, #tpu.memory_space<vmem>>, vector<16x128xf32>
      %c0_18 = arith.constant 0 : index
      %c0_19 = arith.constant 0 : index
      %21 = vector.load %arg8[%c0_18, %c0_19] : memref<1x128xf32, #tpu.memory_space<vmem>>, vector<1x128xf32>
      %22 = vector.broadcast %21 : vector<1x128xf32> to vector<16x128xf32>
      %23 = arith.addf %20, %22 : vector<16x128xf32>
      %c0_20 = arith.constant 0 : index
      %c0_21 = arith.constant 0 : index
      %24 = vector.load %arg9[%c0_20, %c0_21] : memref<16x128xf32, #tpu.memory_space<vmem>>, vector<16x128xf32>
      tpu.vector_store %arg9[%c0_20, %c0_21], %23 {strides = array<i32>} : memref<16x128xf32, #tpu.memory_space<vmem>>, vector<16x128xf32>,
    } else {
    }
    return
  }
  func.func @transform_0(%arg0: i32, %arg1: i32) -> (i32, i32) {
    %c0_i32 = arith.constant 0 : i32
    %c0_i32_0 = arith.constant 0 : i32
    return %arg0, %c0_i32 : i32, i32
  }
  func.func @transform_1(%arg0: i32, %arg1: i32) -> (i32, i32) {
    %c0_i32 = arith.constant 0 : i32
    %c0_i32_0 = arith.constant 0 : i32
    %c0_i32_1 = arith.constant 0 : i32
    return %c0_i32, %c0_i32_0 : i32, i32
  }
  func.func @transform_2(%arg0: i32, %arg1: i32) -> (i32, i32) {
    %c0_i32 = arith.constant 0 : i32
    %c0_i32_0 = arith.constant 0 : i32
    %c0_i32_1 = arith.constant 0 : i32
    return %c0_i32, %c0_i32_0 : i32, i32
  }
  func.func @transform_3(%arg0: i32, %arg1: i32) -> (i32, i32) {
    %c0_i32 = arith.constant 0 : i32
    %c0_i32_0 = arith.constant 0 : i32
    return %arg1, %c0_i32 : i32, i32
  }
  func.func @transform_4(%arg0: i32, %arg1: i32) -> (i32, i32) {
    %c0_i32 = arith.constant 0 : i32
    %c0_i32_0 = arith.constant 0 : i32
    return %c0_i32, %arg1 : i32, i32
  }
  func.func @transform_5(%arg0: i32, %arg1: i32) -> (i32, i32) {
    %c0_i32 = arith.constant 0 : i32
    %c0_i32_0 = arith.constant 0 : i32
    return %arg1, %c0_i32 : i32, i32
  }
  func.func @transform_6(%arg0: i32, %arg1: i32) -> (i32, i32) {
    %c0_i32 = arith.constant 0 : i32
    %c0_i32_0 = arith.constant 0 : i32
    %c0_i32_1 = arith.constant 0 : i32
    return %c0_i32, %c0_i32_0 : i32, i32
  }
  func.func @transform_7(%arg0: i32, %arg1: i32) -> (i32, i32) {
    %c0_i32 = arith.constant 0 : i32
    %c0_i32_0 = arith.constant 0 : i32
    return %arg0, %c0_i32 : i32, i32
  }
}

</mosaic_0001>

<bundles_post_ra>
// kernel: ffn_encoder_layer.1
= control target key start
LH: loop header
LB: loop body
LE: loop exit
PB: predicated region body
PF: predicated region fallthrough
CT: control target
= control target key end

     0   :  { %s816_s0 = inlined_call_operand.vmem [shape: f32[16,128], index: 0, kind: input, shape index: {}]   ;;  %s817_s1 = inlined_call_operand.vmem [shape: f32[1,128], index: 1, kind: input, shape index: {}]   ;;  %s818_s2 = inlined_call_operand.vmem [shape: f32[1,128], index: 2, kind: input, shape index: {}]   ;;  %s819_s3 = inlined_call_operand.vmem [shape: bf16[256,128], index: 3, kind: input, shape index: {}]   ;;  %s820_s4 = inlined_call_operand.vmem [shape: f32[1,256], index: 4, kind: input, shape index: {}]   ;;  %s821_s5 = inlined_call_operand.vmem [shape: bf16[256,128], index: 5, kind: input, shape index: {}]   ;;  %s822_s6 = inlined_call_operand.vmem [shape: f32[1,128], index: 6, kind: input, shape index: {}]   ;;  %s823_s7 = inlined_call_operand.hbm [shape: f32[16,128], index: 7, kind: output, shape index: {}]  }
   0x1   :  { %v688_v0 = vld [vmem:[%s816_s0] sm:$0xff]  ;;  %v693_v1 = vld [vmem:[%s816_s0 + $0x8] sm:$0xff]  ;;  %v583_v3 = vld [vmem:[%s819_s3 + $0x78] sm:$0xff]  }
   0x2   :  { %34 = vadd.xlane.f32.xlu0 %v688_v0  ;;  %v41_v2 = vmul.f32 %v688_v0, %v688_v0  ;;  %v584_v4 = vld [vmem:[%s819_s3 + $0x38] sm:$0xff]   ;;  %v42_v5 = vmul.f32 %v693_v1, %v693_v1  ;;  %540 = vmatprep.subr.bf16.mxu0 %v583_v3  ;;  %v585_v6 = vld [vmem:[%s819_s3 + $0x70] sm:$0xff]   ;;  %v587_v8 = vld [vmem:[%s819_s3 + $0x68] sm:$0xff]  }
   0x3   :  { %541 = vmatpush3.bf16.xpose.msra.mxu0 %v584_v4  ;;  %v586_v7 = vld [vmem:[%s819_s3 + $0x30] sm:$0xff]   ;;  %v588_v9 = vld [vmem:[%s819_s3 + $0x28] sm:$0xff]   ;;  %v589_v10 = vld [vmem:[%s819_s3 + $0x60] sm:$0xff]  }
   0x4   :  { %43 = vadd.xlane.f32.xlu1 %v41_v2  ;;  %542 = vmatprep.subr.bf16.mxu0 %v585_v6  ;;  %v590_v11 = vld [vmem:[%s819_s3 + $0x20] sm:$0xff]   ;;  %v591_v12 = vld [vmem:[%s819_s3 + $0x58] sm:$0xff]  }
   0x6   :  { %36 = vadd.xlane.f32.xlu0 %v693_v1 }
   0x8   :  { %45 = vadd.xlane.f32.xlu1 %v42_v5 }
   0xb   :  { %543 = vmatpush3.bf16.xpose.msra.mxu0 %v586_v7 }
   0xc   :  { %544 = vmatprep.subr.bf16.mxu0 %v587_v8 }
  0x13   :  { %545 = vmatpush3.bf16.xpose.msra.mxu0 %v588_v9 }
  0x14   :  { %546 = vmatprep.subr.bf16.mxu0 %v589_v10 }
  0x15   :  { %12 = vsyncpa [#allocation5], 0  ;;  %v592_v13 = vld [vmem:[%s819_s3 + $0x18] sm:$0xff]   ;;  %v593_v14 = vld [vmem:[%s819_s3 + $0x50] sm:$0xff]   ;;  %v127_v2 = vlaneseq  ;;  %s642_s23 = smov [#allocation4]  }
  0x16   :  { %v594_v15 = vld [vmem:[%s819_s3 + $0x10] sm:$0xff]   ;;  %v595_v16 = vld [vmem:[%s819_s3 + $0x48] sm:$0xff]   ;;  %v597_v18 = vld [vmem:[%s819_s3 + $0x40] sm:$0xff]   ;;  %s484_s24 = sshll.u32 %s642_s23, 4  ;;  %s485_s24 = int_to_ptr.vmem [resolvable:$true] %s484_s24 }
  0x17   :  { %v596_v17 = vld [vmem:[%s819_s3 + $0x8] sm:$0xff]   ;;  %v600_v19 = vld [vmem:[%s821_s5 + $0x78] sm:$0xff]   ;;  %v602_v21 = vld [vmem:[%s821_s5 + $0x70] sm:$0xff]   ;;  %v128_v3 = vshrl.u32 %v127_v2, 7  ;;  %p625_p1 = scmp.lt.s32.totalorder %s485_s24, %s485_s24 }
  0x18   :  { %v601_v20 = vld [vmem:[%s821_s5 + $0x38] sm:$0xff]   ;;  %v598_v22 = vld [vmem:[%s819_s3] sm:$0xff]   ;;  %558 = vmatprep.subr.bf16.mxu1 %v600_v19  ;;  %v603_v23 = vld [vmem:[%s821_s5 + $0x30] sm:$0xff]   ;;  %s620_s3 = scalar_lea.vmem %s485_s24, 256 }
  0x19   :  { %559 = vmatpush3.bf16.msra.mxu1 %v601_v20  ;;  %v604_v24 = vld [vmem:[%s821_s5 + $0x68] sm:$0xff]   ;;  %v606_v26 = vld [vmem:[%s821_s5 + $0x60] sm:$0xff]   ;;  %v608_v28 = vld [vmem:[%s821_s5 + $0x58] sm:$0xff]   ;;  %v133_v4 = vsub.s32 1, %v128_v3  ;;  %v129_v5 = vsub.s32 0, %v128_v3  ;;  %p621_p0 = scmp.ne.s32.totalorder %s485_s24, %s620_s3  ;;  %p626_p2 = scmp.lt.s32.totalorder %s620_s3, %s620_s3 }
  0x1a   :  { %560 = vmatprep.subr.bf16.mxu1 %v602_v21  ;;  %v605_v25 = vld [vmem:[%s821_s5 + $0x28] sm:$0xff]   ;;  %v607_v27 = vld [vmem:[%s821_s5 + $0x20] sm:$0xff]   ;;  %v609_v29 = vld [vmem:[%s821_s5 + $0x18] sm:$0xff]  }
  0x1b   :  { %547 = vmatpush3.bf16.xpose.msra.mxu0 %v590_v11  ;;  %v495_v47 = vld [vmem:[%s817_s1] ss:$0 sm:$0xff]  ;;  %v610_v58 = vld [vmem:[%s821_s5 + $0x50] sm:$0xff]   ;;  %v612_v60 = vld [vmem:[%s821_s5 + $0x48] sm:$0xff]   ;;  %p627_p3 = por %p626_p2, %p625_p1 }
  0x1c   :  { %548 = vmatprep.subr.bf16.mxu0 %v591_v12  ;;  %v496_v52 = vld [vmem:[%s818_s2] ss:$0 sm:$0xff]  ;;  %v611_v59 = vld [vmem:[%s821_s5 + $0x10] sm:$0xff]   ;;  %v613_v61 = vld [vmem:[%s821_s5 + $0x8] sm:$0xff]  }
  0x1d   :  { %561 = vmatpush3.bf16.msra.mxu1 %v603_v23  ;;  %v614_v62 = vld [vmem:[%s821_s5 + $0x40] sm:$0xff]   ;;  %p628_p4 = pnand %p627_p3, %p621_p0 }
  0x1e   :  { %562 = vmatprep.subr.bf16.mxu1 %v604_v24  ;;  %v615_v63 = vld [vmem:[%s821_s5] sm:$0xff]  }
  0x1f   :  { %v125_v6 = vld [vmem:[%s820_s4] sm:$0x3] }
  0x20   :  { %v134_v8 = vrot.slane %v125_v6, %v133_v4  ;;  %v130_v9 = vrot.slane %v125_v6, %v129_v5 }
  0x21   :  { %563 = vmatpush3.bf16.msra.mxu1 %v605_v25 }
  0x22   :  { %564 = vmatprep.subr.bf16.mxu1 %v606_v26  ;;  %v532_v26 = vld [vmem:[%s822_s6] ss:$0 sm:$0xff] }
  0x23   :  { %549 = vmatpush3.bf16.xpose.msra.mxu0 %v592_v13 }
  0x24   :  { %550 = vmatprep.subr.bf16.mxu0 %v593_v14 }
  0x25   :  { %565 = vmatpush3.bf16.msra.mxu1 %v607_v27 }
  0x26   :  { %566 = vmatprep.subr.bf16.mxu1 %v608_v28 }
  0x29   :  { %567 = vmatpush3.bf16.msra.mxu1 %v609_v29 }
  0x2a   :  { %568 = vmatprep.subr.bf16.mxu1 %v610_v58 }
  0x2b   :  { %551 = vmatpush3.bf16.xpose.msra.mxu0 %v594_v15 }
  0x2c   :  { %552 = vmatprep.subr.bf16.mxu0 %v595_v16 }
  0x2d   :  { %569 = vmatpush3.bf16.msra.mxu1 %v611_v59 }
  0x2e   :  { %570 = vmatprep.subr.bf16.mxu1 %v612_v60 }
  0x31   :  { %571 = vmatpush3.bf16.msra.mxu1 %v613_v61 }
  0x32   :  { %572 = vmatprep.subr.bf16.mxu1 %v614_v62 }
  0x33   :  { %553 = vmatpush3.bf16.xpose.msra.mxu0 %v596_v17 }
  0x34   :  { %554 = vmatprep.subr.bf16.mxu0 %v597_v18 }
  0x35   :  { %573 = vmatpush3.bf16.msra.mxu1 %v615_v63 }
  0x3b   :  { %555 = vmatpush3.bf16.xpose.msra.mxu0 %v598_v22 }
  0x8b   :  { %v35_v30 = vpop.xlane.xlu0 %34 }
  0x8c   :  { %v39_v31 = vmul.f32 0.0078125, %v35_v30 }
  0x8d   :  { %v44_v32 = vpop.xlane.xlu1 %43 }
  0x8e   :  { %v49_v33 = vmul.f32 %v39_v31, %v39_v31  ;;  %v47_v34 = vmul.f32 0.0078125, %v44_v32  ;;  %v53_v44 = vsub.f32 %v688_v0, %v39_v31 }
  0x8f   :  { %v37_v35 = vpop.xlane.xlu0 %36 }
  0x90   :  { %v51_v36 = vsub.f32 %v47_v34, %v49_v33  ;;  %v40_v37 = vmul.f32 0.0078125, %v37_v35 }
  0x91   :  { %v46_v38 = vpop.xlane.xlu1 %45 }
  0x92   :  { %v55_v39 = vadd.f32 1e-05, %v51_v36  ;;  %v50_v40 = vmul.f32 %v40_v37, %v40_v37  ;;  %v48_v41 = vmul.f32 0.0078125, %v46_v38  ;;  %v54_v48 = vsub.f32 %v693_v1, %v40_v37 }
  0x94   :  { %616 = vrsqrt.f32 %v55_v39  ;;  %v52_v42 = vsub.f32 %v48_v41, %v50_v40 }
  0x96   :  { %v56_v43 = vadd.f32 1e-05, %v52_v42 }
  0x98   :  { %618 = vrsqrt.f32 %v56_v43 }
  0xa1   :  { %v617_v45 = vpop.eup %616 }
  0xa2   :  { %v59_v46 = vmul.f32 %v617_v45, %v53_v44 }
  0xa4   :  { %v68_v50 = vmul.f32 %v495_v47, %v59_v46 }
  0xa5   :  { %v619_v49 = vpop.eup %618 }
  0xa6   :  { %v60_v51 = vmul.f32 %v619_v49, %v54_v48  ;;  %v77_v54 = vadd.f32 %v496_v52, %v68_v50 }
  0xa8   :  { %v69_v53 = vmul.f32 %v495_v47, %v60_v51 }
  0xaa   :  { %v78_v55 = vadd.f32 %v496_v52, %v69_v53 }
  0xac   :  { %v538_v56 = vpack.c.bf16 %v78_v55, %v77_v54 }
  0xae   :  { %539 = vst [vmem:[#allocation2] sm:$0xff] %v538_v56  }
  0xb5   :  { %v599_v57 = vld [vmem:[#allocation2] sm:$0xff]  }
  0xb6   :  { %556 = vmatprep.mubr.bf16.mxu0 %v599_v57 }
  0xb7   :  { %557 = vmatmul.mubr.bf16.vlgmr.msra.gmra.mxu0 %v599_v57 }
 0x177   :  { %v273_v7 = vpop.f32.mrf.mxu0 }
 0x178   :  { %v274_v14 = vadd.f32 %v273_v7, %v130_v9 }
 0x179   :  { %v275_v10 = vpop.f32.mrf.mxu0 }
 0x17a   :  { %v276_v12 = vadd.f32 %v275_v10, %v134_v8  ;;  %v282_v20 = vmax.f32 %v274_v14, 0.0 }
 0x17b   :  { %v277_v11 = vpop.f32.mrf.mxu0 }
 0x17c   :  { %v278_v13 = vadd.f32 %v277_v11, %v130_v9  ;;  %v283_v18 = vmax.f32 %v276_v12, 0.0 }
 0x17d   :  { %v279_v15 = vpop.f32.mrf.mxu0 }
 0x17e   :  { %v280_v16 = vadd.f32 %v279_v15, %v134_v8  ;;  %v284_v17 = vmax.f32 %v278_v13, 0.0 }
 0x180   :  { %v285_v19 = vmax.f32 %v280_v16, 0.0  ;;  %v286_v22 = vpack.c.bf16 %v284_v17, %v282_v20 }
 0x182   :  { %v287_v21 = vpack.c.bf16 %v285_v19, %v283_v18 }
 0x184   :  { %450 = vmatprep.mubr.bf16.mxu1 %v287_v21 }
 0x185   :  { %451 = vmatmul.mubr.bf16.vlgmr.msra.gmra.mxu1 %v286_v22 }
 0x245   :  { %v574_v23 = vpop.f32.mrf.mxu1 }
 0x247   :  { %v575_v24 = vpop.f32.mrf.mxu1 }
 0x248   :  { %v576_v25 = vadd.f32 %v575_v24, %v574_v23 }
 0x249   :  { %v577_v27 = vpop.f32.mrf.mxu1 }
 0x24a   :  { %v459_v28 = vadd.f32 %v576_v25, %v688_v0 }
 0x24b   :  { %v578_v29 = vpop.f32.mrf.mxu1 }
 0x24c   :  { %v475_v30 = vadd.f32 %v532_v26, %v459_v28  ;;  %v579_v31 = vadd.f32 %v578_v29, %v577_v27 }
 0x24e   :  { %477 = vst [vmem:[#allocation4] sm:$0xff] %v475_v30  ;;  %v460_v32 = vadd.f32 %v579_v31, %v693_v1 }
 0x250   :  { %v476_v33 = vadd.f32 %v532_v26, %v460_v32 }
 0x252   :  { %478 = vst [vmem:[#allocation4 + $0x8] sm:$0xff] %v476_v33 }
 0x253   :  { %631 = shalt.err (!%p628_p4)
}
 0x254   :  { %s643_s6 = smov 128   ;;  %s644_s25 = smov 8  }
 0x255   :  { %490 = dma.vmem_to_hbm [thread:$0]  %s485_s24, 256, %s823_s7, [#allocation5], %s643_s6, %s643_s6, %s644_s25  }
 0x256   :  { %640 = dma.done.wait [#allocation5], 256  }
 0x257   :  { %641 = vsyncadd [#allocation5], 4294967040 }
 0x258   :  { %494 = vsyncpa [#allocation5], 1 }

</bundles_post_ra>
